<compile_context>
chip_gen: v5e
topology: v5e:2x2
jax: 0.10.0
libtpu: 0.0.40
codegen_flags: <defaults>
</compile_context>

<pallas_src>
import jax
import jax.numpy as jnp
from jax.experimental import pallas as pl
from jax.experimental.pallas import tpu as pltpu


# ---------------------------------------------------------------------------
# Slab geometry
# ---------------------------------------------------------------------------
_MAX_TILE_ROWS = 512          # 512 x 512 f32 = 1 MiB block per input
_MIN_TILE_ROWS = 128
_VMEM_LIMIT_BYTES = 32 * 1024 * 1024   # legal on v5e / v6e / v7x


def _plan(n):
    """Pick (lane, rows, pad_elems, tile_rows, n_split) for `n` elements.

    Guarantees: rows * lane - pad_elems == n, rows % tile_rows == 0,
    (rows // tile_rows) % n_split == 0, and (tile_rows, lane) is a legal TPU
    block (multiple of (8, 128) or equal to the full slab).
    """
    lane = next((l for l in (512, 256, 128) if n % l == 0), 128)
    rows = pl.cdiv(n, lane)

    if rows <= _MAX_TILE_ROWS:
        # Single grid step; block == full slab is always a legal block shape.
        return lane, rows, rows * lane - n, rows, 1

    # Multi-block: largest tile (multiple of 8) that divides `rows` exactly,
    # preferring an even block count so the grid can be split across the two
    # TensorCores of a v7x megacore via the leading "parallel" axis.
    start = max(8, _MAX_TILE_ROWS - _MAX_TILE_ROWS % 8)
    best = None
    best_even = None
    for t in range(start, max(8, _MIN_TILE_ROWS) - 1, -8):
        if rows % t == 0:
            if best is None:
                best = t
            if (rows // t) % 2 == 0:
                best_even = t
                break
    if best_even is not None:
        return lane, rows, rows * lane - n, best_even, 2
    if best is not None:
        return lane, rows, rows * lane - n, best, 1

    # Awkward row count: pad rows up to a multiple of 2 * tile (zero padding is
    # safe because the masks pad with zeros, so padded elements contribute to
    # neither numerator nor denominator).
    tile = start
    chunk = 2 * tile
    rows_p = pl.cdiv(rows, chunk) * chunk
    return lane, rows_p, rows_p * lane - n, tile, 2


# ---------------------------------------------------------------------------
# Kernel factory
# ---------------------------------------------------------------------------
def _make_kernel(*, loss_type, huber_k, want_main, want_wmap, acc_rows):
    """Builds a fused masked-reduction kernel.

    Inputs (in order): pred, gt, [main_mask], [wmap, wmap_mask].
    Output block (n_out, acc_rows, lane) is a resident vector accumulator:
      [sum(err*mask), sum(mask)] for the main loss and/or the weightmap loss.
    """
    n_in = 2 + int(want_main) + 2 * int(want_wmap)

    def kernel(*refs):
        out_ref = refs[-1]
        pred_ref, gt_ref = refs[0], refs[1]
        pos = 2
        if want_main:
            mmask_ref = refs[pos]
            pos += 1
        if want_wmap:
            wmap_ref, wmask_ref = refs[pos], refs[pos + 1]
        assert len(refs) == n_in + 1

        # Zero the resident accumulator on the first step of this split.
        @pl.when(pl.program_id(1) == 0)
        def _():
            out_ref[...] = jnp.zeros_like(out_ref)

        pred = pred_ref[...].astype(jnp.float32)
        gt = gt_ref[...].astype(jnp.float32)
        diff = pred - gt

        def fold(x):
            """Lane-preserving partial reduce to (acc_rows, lane).

            Pure VPU (sublane-aligned slice + add tree); the final cross-lane
            reduce happens once, outside the kernel, on the tiny output.
            """
            r = x.shape[0]
            if r == acc_rows:
                return x
            if acc_rows == 1:
                return jnp.sum(x, axis=0, keepdims=True)
            parts = [x[s:s + acc_rows, :] for s in range(0, r, acc_rows)]
            while len(parts) > 1:
                nxt = [a + b for a, b in zip(parts[0::2], parts[1::2])]
                if len(parts) % 2:
                    nxt.append(parts[-1])
                parts = nxt
            return parts[0]

        slot = 0
        if want_main:
            if loss_type == "l2":
                err = diff * diff
            elif loss_type == "l1":
                err = jnp.abs(diff)
            elif loss_type == "huber":
                d = jnp.abs(diff)
                err = jnp.where(d <= huber_k, 0.5 * d * d,
                                huber_k * d - 0.5 * huber_k * huber_k)
            else:  # pragma: no cover - static dispatch
                raise ValueError(f"unknown loss_type {loss_type}")
            mm = mmask_ref[...].astype(jnp.float32)
            out_ref[slot] += fold(err * mm)
            out_ref[slot + 1] += fold(mm)
            slot += 2

        if want_wmap:
            wmap = wmap_ref[...].astype(jnp.float32)
            mw = wmask_ref[...].astype(jnp.float32)
            errormap = jnp.exp(jnp.abs(diff) * (-1.0 / 0.025))
            werr = (wmap - errormap) * (wmap - errormap)
            out_ref[slot] += fold(werr * mw)
            out_ref[slot + 1] += fold(mw)

    return kernel


# ---------------------------------------------------------------------------
# Driver: one fused pallas_call returning the (num, den, ...) partial sums
# ---------------------------------------------------------------------------
def _masked_sums(arrays, *, loss_type, huber_k, want_main, want_wmap):
    """Returns the (n_out,) vector of [num_main, den_main, num_wmap, den_wmap]
    sums (subset depending on the flags). Division happens in JAX."""
    n_out = 2 * int(want_main) + 2 * int(want_wmap)
    n = int(arrays[0].size)

    lane, rows, pad_elems, tile_rows, n_split = _plan(n)
    num_blocks = rows // tile_rows
    steps = num_blocks // n_split
    if tile_rows % 8 == 0:
        acc_rows = 8
    elif tile_rows <= 8:
        acc_rows = tile_rows
    else:
        acc_rows = 1

    slabs = []
    for a in arrays:
        flat = jnp.asarray(a).reshape(-1)          # native dtype, no upcast
        if pad_elems:
            flat = jnp.pad(flat, (0, pad_elems))   # zeros: masks pad to 0
        slabs.append(flat.reshape(rows, lane))

    kernel = _make_kernel(loss_type=loss_type, huber_k=huber_k,
                          want_main=want_main, want_wmap=want_wmap,
                          acc_rows=acc_rows)

    in_specs = [pl.BlockSpec((tile_rows, lane), lambda c, i: (c * steps + i, 0))
                for _ in slabs]
    out_specs = pl.BlockSpec((n_out, acc_rows, lane), lambda c, i: (c, 0, 0))

    out = pl.pallas_call(
        kernel,
        out_shape=jax.ShapeDtypeStruct((n_split * n_out, acc_rows, lane),
                                       jnp.float32),
        grid_spec=pltpu.PrefetchScalarGridSpec(
            num_scalar_prefetch=0,
            grid=(n_split, steps),
            in_specs=in_specs,
            out_specs=out_specs,
        ),
        compiler_params=pltpu.CompilerParams(
            dimension_semantics=("parallel", "arbitrary"),
            vmem_limit_bytes=_VMEM_LIMIT_BYTES,
        ),
    )(*slabs)

    # Combine per-core partials and do the single cross-lane reduce in JAX.
    return out.reshape(n_split, n_out, acc_rows * lane).sum(axis=(0, 2))


# ---------------------------------------------------------------------------
# Criterion (forward-pass port of the PyTorch module)
# ---------------------------------------------------------------------------
class Criterion:
    # loss-method name -> (elementwise loss type, mask key in data_dict)
    _DISPATCH = {
        "mse_loss": ("l2", "zero_mask"),
        "l2_loss": ("l2", "zero_mask"),
        "masked_mse_loss": ("l2", "initial_loss_mask"),
        "masked_l2_loss": ("l2", "initial_loss_mask"),
        "custom_masked_mse_loss": ("l2", "loss_mask"),
        "custom_masked_l2_loss": ("l2", "loss_mask"),
        "l1_loss": ("l1", "zero_mask"),
        "masked_l1_loss": ("l1", "initial_loss_mask"),
        "custom_masked_l1_loss": ("l1", "loss_mask"),
        "huber_loss": ("huber", "zero_mask"),
        "masked_huber_loss": ("huber", "initial_loss_mask"),
        "custom_masked_huber_loss": ("huber", "loss_mask"),
    }

    def __init__(self, type, combined_smooth=False, combined_weightmap=False,
                 **kwargs):
        self.epsilon = kwargs.get("epsilon", 1e-08)
        self.type = str.lower(type)
        if self.type not in self._DISPATCH:
            raise ValueError(f"unsupported loss type: {self.type}")
        self._loss_type, self._mask_key = self._DISPATCH[self.type]
        self.huber_k = kwargs.get("huber_k", 0.1) if "huber" in self.type else 0.0

        self.combined_smooth = combined_smooth
        if combined_smooth:
            self.combined_beta = kwargs.get("combined_beta", 0.005)
            self.combined_beta_decay = kwargs.get("combined_beta_decay", 0.1)
            self.combined_beta_decay_milestones = kwargs.get(
                "combined_beta_decay_milestones", [])
            self.cur_epoch = kwargs.get("cur_epoch", 0)
            for milestone in self.combined_beta_decay_milestones:
                if milestone <= self.cur_epoch:
                    self.combined_beta = self.combined_beta * self.combined_beta_decay

        self.combined_weightmap = bool(combined_weightmap)
        if combined_weightmap:
            self.weight_weightmap = kwargs.get("weightmap_beta", 0.005)

    def step(self):
        if self.combined_smooth:
            self.cur_epoch += 1
            if self.cur_epoch in self.combined_beta_decay_milestones:
                self.combined_beta = self.combined_beta * self.combined_beta_decay

    # -- main (masked) loss: single Pallas pass ------------------------------
    def main_loss(self, data_dict):
        s = _masked_sums(
            [data_dict["pred"], data_dict["depth_gt"], data_dict[self._mask_key]],
            loss_type=self._loss_type, huber_k=float(self.huber_k),
            want_main=True, want_wmap=False)
        return s[0] / (s[1] + self.epsilon)

    # -- weightmap loss: single Pallas pass ----------------------------------
    def weightmap_loss(self, data_dict):
        s = _masked_sums(
            [data_dict["pred"], data_dict["depth_gt"],
             data_dict["wmap"], data_dict["loss_mask"]],
            loss_type=self._loss_type, huber_k=float(self.huber_k),
            want_main=False, want_wmap=True)
        return s[0] / (s[1] + self.epsilon)

    # -- fused main + weightmap: pred / depth_gt streamed from HBM once ------
    def _main_and_weightmap_loss(self, data_dict):
        s = _masked_sums(
            [data_dict["pred"], data_dict["depth_gt"], data_dict[self._mask_key],
             data_dict["wmap"], data_dict["loss_mask"]],
            loss_type=self._loss_type, huber_k=float(self.huber_k),
            want_main=True, want_wmap=True)
        return s[0] / (s[1] + self.epsilon), s[2] / (s[3] + self.epsilon)

    def smooth_loss(self, data_dict):
        # TODO(synk): requires external get_surface_normal_from_depth (not in reference).
        raise NotImplementedError("smooth_loss not available in the Pallas port")

    def forward(self, data_dict):
        if self.combined_weightmap:
            main, wmap_l = self._main_and_weightmap_loss(data_dict)
        else:
            main = self.main_loss(data_dict)

        loss_dict = {self.type: main}
        if self.combined_smooth:
            loss_dict["smooth"] = self.smooth_loss(data_dict)
            loss_dict["loss"] = main + self.combined_beta * loss_dict["smooth"]
        else:
            loss_dict["loss"] = main
        if self.combined_weightmap:
            loss_dict["weightmap"] = wmap_l
            # NOTE: mirrors the reference, which overwrites any smooth term here.
            loss_dict["loss"] = main + self.weight_weightmap * wmap_l
        return loss_dict

    __call__ = forward


# ---------------------------------------------------------------------------
# Pure-JAX reference + self-test
# ---------------------------------------------------------------------------
def _ref_safe_mean(x, mask, eps=1e-8):
    return jnp.sum(x * mask) / (jnp.sum(mask) + eps)


if __name__ == "__main__":
    def make_data(key, shape):
        k1, k2, k3, k4, k5 = jax.random.split(key, 5)
        pred = jax.random.normal(k1, shape, jnp.float32)
        depth_gt = jax.random.normal(k2, shape, jnp.float32)
        zero_mask = (jax.random.uniform(k3, shape) > 0.2).astype(jnp.float32)
        loss_mask = (jax.random.uniform(k4, shape) > 0.3).astype(jnp.float32)
        wmap = jax.random.uniform(k5, shape, dtype=jnp.float32)
        return {"pred": pred, "depth_gt": depth_gt, "zero_mask": zero_mask,
                "initial_loss_mask": zero_mask, "loss_mask": loss_mask,
                "wmap": wmap}

    key = jax.random.PRNGKey(0)
    k_small, k_med = jax.random.split(key)

    # ---- small shape: single-block path (fused MSE + weightmap, plain Huber)
    data = make_data(k_small, (2, 1, 16, 16))
    crit = Criterion("mse_loss", combined_weightmap=True)
    out = crit(data)
    jax.block_until_ready(out["loss"])

    crit_h = Criterion("huber_loss", huber_k=0.1)
    out_h = crit_h(data)
    jax.block_until_ready(out_h["loss"])

    d = jnp.abs(data["pred"] - data["depth_gt"])
    ref_mse = _ref_safe_mean((data["pred"] - data["depth_gt"]) ** 2, data["zero_mask"])
    ref_hub = _ref_safe_mean(jnp.where(d <= 0.1, d * d / 2, 0.1 * d - 0.1 ** 2 / 2),
                             data["zero_mask"])
    ref_wm = _ref_safe_mean((data["wmap"] - jnp.exp(-d / 0.025)) ** 2, data["loss_mask"])

    assert jnp.allclose(out["mse_loss"], ref_mse, rtol=1e-4, atol=1e-6)
    assert jnp.allclose(out["weightmap"], ref_wm, rtol=1e-4, atol=1e-6)
    assert jnp.allclose(out["loss"], ref_mse + 0.005 * ref_wm, rtol=1e-4, atol=1e-6)
    assert jnp.allclose(out_h["loss"], ref_hub, rtol=1e-4, atol=1e-6)

    # ---- exercise the multi-step + two-way-split (v7x megacore) path at a
    #      small size by temporarily shrinking the tiling thresholds.
    _saved = (_MAX_TILE_ROWS, _MIN_TILE_ROWS)
    _MAX_TILE_ROWS, _MIN_TILE_ROWS = 8, 8

    data_m = make_data(k_med, (2, 4, 64, 32))           # 16384 elems -> 32 rows of 512
    assert _plan(data_m["pred"].size)[3:] == (8, 2)      # tile_rows=8, 2-way split

    crit_m = Criterion("masked_l1_loss", combined_weightmap=True)
    out_m = crit_m(data_m)
    jax.block_until_ready(out_m["loss"])

    d_m = jnp.abs(data_m["pred"] - data_m["depth_gt"])
    ref_l1 = _ref_safe_mean(d_m, data_m["initial_loss_mask"])
    ref_wm_m = _ref_safe_mean((data_m["wmap"] - jnp.exp(-d_m / 0.025)) ** 2,
                              data_m["loss_mask"])
    assert jnp.allclose(out_m["masked_l1_loss"], ref_l1, rtol=1e-4, atol=1e-6)
    assert jnp.allclose(out_m["weightmap"], ref_wm_m, rtol=1e-4, atol=1e-6)
    assert jnp.allclose(out_m["loss"], ref_l1 + 0.005 * ref_wm_m, rtol=1e-4, atol=1e-6)

    _MAX_TILE_ROWS, _MIN_TILE_ROWS = _saved

    print("KERNEL_OK")
</pallas_src>

<mosaic_0001>
module attributes {stable_mosaic.version = 11 : i64} {
  func.func @kernel(%arg0: i32, %arg1: i32, %arg2: memref<1x512xf32, #tpu.memory_space<vmem>>, %arg3: memref<1x512xf32, #tpu.memory_space<vmem>>, %arg4: memref<1x512xf32, #tpu.memory_space<vmem>>, %arg5: memref<1x512xf32, #tpu.memory_space<vmem>>, %arg6: memref<1x512xf32, #tpu.memory_space<vmem>>, %arg7: memref<4x1x512xf32, #tpu.memory_space<vmem>>) attributes {dimension_semantics = [#tpu.dimension_semantics<parallel>, #tpu.dimension_semantics<arbitrary>], iteration_bounds = array<i64: 1, 1>, scalar_prefetch = 0 : i64, scratch_operands = 0 : i64, tpu.core_type = #tpu.core_type<tc>, window_params = [{transform_indices = @transform_0, window_bounds = array<i64: 1, 512>}, {transform_indices = @transform_1, window_bounds = array<i64: 1, 512>}, {transform_indices = @transform_2, window_bounds = array<i64: 1, 512>}, {transform_indices = @transform_3, window_bounds = array<i64: 1, 512>}, {transform_indices = @transform_4, window_bounds = array<i64: 1, 512>}, {transform_indices = @transform_5, window_bounds = array<i64: 4, 1, 512>}]} {
    %c0_i32 = arith.constant 0 : i32
    %0 = arith.cmpi eq, %arg1, %c0_i32 : i32
    %1 = arith.extui %0 : i1 to i32
    %c0_i32_0 = arith.constant 0 : i32
    %2 = arith.cmpi ne, %1, %c0_i32_0 : i32
    scf.if %2 {
      %cst_31 = arith.constant 0.000000e+00 : f32
      %43 = vector.broadcast %cst_31 : f32 to vector<4x1x512xf32>
      %c0_32 = arith.constant 0 : index
      %c0_33 = arith.constant 0 : index
      %c0_34 = arith.constant 0 : index
      %44 = vector.load %arg7[%c0_32, %c0_33, %c0_34] : memref<4x1x512xf32, #tpu.memory_space<vmem>>, vector<4x1x512xf32>
      tpu.vector_store %arg7[%c0_32, %c0_33, %c0_34], %43 {strides = array<i32>} : memref<4x1x512xf32, #tpu.memory_space<vmem>>, vector<4x1x512xf32>,
    } else {
    }
    %c0 = arith.constant 0 : index
    %c0_1 = arith.constant 0 : index
    %3 = vector.load %arg2[%c0, %c0_1] : memref<1x512xf32, #tpu.memory_space<vmem>>, vector<1x512xf32>
    %c0_2 = arith.constant 0 : index
    %c0_3 = arith.constant 0 : index
    %4 = vector.load %arg3[%c0_2, %c0_3] : memref<1x512xf32, #tpu.memory_space<vmem>>, vector<1x512xf32>
    %5 = arith.subf %3, %4 : vector<1x512xf32>
    %6 = arith.mulf %5, %5 : vector<1x512xf32>
    %c0_4 = arith.constant 0 : index
    %c0_5 = arith.constant 0 : index
    %7 = vector.load %arg4[%c0_4, %c0_5] : memref<1x512xf32, #tpu.memory_space<vmem>>, vector<1x512xf32>
    %c0_6 = arith.constant 0 : index
    %c0_7 = arith.constant 0 : index
    %c0_8 = arith.constant 0 : index
    %8 = vector.load %arg7[%c0_6, %c0_7, %c0_8] : memref<4x1x512xf32, #tpu.memory_space<vmem>>, vector<1x1x512xf32>
    %9 = vector.shape_cast %8 : vector<1x1x512xf32> to vector<1x512xf32>
    %10 = arith.mulf %6, %7 : vector<1x512xf32>
    %11 = arith.addf %9, %10 : vector<1x512xf32>
    %c0_9 = arith.constant 0 : index
    %c0_10 = arith.constant 0 : index
    %c0_11 = arith.constant 0 : index
    %12 = vector.load %arg7[%c0_9, %c0_10, %c0_11] : memref<4x1x512xf32, #tpu.memory_space<vmem>>, vector<1x1x512xf32>
    %13 = vector.shape_cast %12 : vector<1x1x512xf32> to vector<1x512xf32>
    %14 = vector.shape_cast %11 : vector<1x512xf32> to vector<1x1x512xf32>
    tpu.vector_store %arg7[%c0_9, %c0_10, %c0_11], %14 {strides = array<i32>} : memref<4x1x512xf32, #tpu.memory_space<vmem>>, vector<1x1x512xf32>,
    %c1 = arith.constant 1 : index
    %c0_12 = arith.constant 0 : index
    %c0_13 = arith.constant 0 : index
    %15 = vector.load %arg7[%c1, %c0_12, %c0_13] : memref<4x1x512xf32, #tpu.memory_space<vmem>>, vector<1x1x512xf32>
    %16 = vector.shape_cast %15 : vector<1x1x512xf32> to vector<1x512xf32>
    %17 = arith.addf %16, %7 : vector<1x512xf32>
    %c1_14 = arith.constant 1 : index
    %c0_15 = arith.constant 0 : index
    %c0_16 = arith.constant 0 : index
    %18 = vector.load %arg7[%c1_14, %c0_15, %c0_16] : memref<4x1x512xf32, #tpu.memory_space<vmem>>, vector<1x1x512xf32>
    %19 = vector.shape_cast %18 : vector<1x1x512xf32> to vector<1x512xf32>
    %20 = vector.shape_cast %17 : vector<1x512xf32> to vector<1x1x512xf32>
    tpu.vector_store %arg7[%c1_14, %c0_15, %c0_16], %20 {strides = array<i32>} : memref<4x1x512xf32, #tpu.memory_space<vmem>>, vector<1x1x512xf32>,
    %c0_17 = arith.constant 0 : index
    %c0_18 = arith.constant 0 : index
    %21 = vector.load %arg5[%c0_17, %c0_18] : memref<1x512xf32, #tpu.memory_space<vmem>>, vector<1x512xf32>
    %c0_19 = arith.constant 0 : index
    %c0_20 = arith.constant 0 : index
    %22 = vector.load %arg6[%c0_19, %c0_20] : memref<1x512xf32, #tpu.memory_space<vmem>>, vector<1x512xf32>
    %23 = math.absf %5 : vector<1x512xf32>
    %cst = arith.constant -4.000000e+01 : f32
    %24 = vector.broadcast %cst : f32 to vector<1x512xf32>
    %25 = arith.mulf %23, %24 : vector<1x512xf32>
    %26 = math.exp %25 : vector<1x512xf32>
    %27 = arith.subf %21, %26 : vector<1x512xf32>
    %28 = arith.subf %21, %26 : vector<1x512xf32>
    %29 = arith.mulf %27, %28 : vector<1x512xf32>
    %c2 = arith.constant 2 : index
    %c0_21 = arith.constant 0 : index
    %c0_22 = arith.constant 0 : index
    %30 = vector.load %arg7[%c2, %c0_21, %c0_22] : memref<4x1x512xf32, #tpu.memory_space<vmem>>, vector<1x1x512xf32>
    %31 = vector.shape_cast %30 : vector<1x1x512xf32> to vector<1x512xf32>
    %32 = arith.mulf %29, %22 : vector<1x512xf32>
    %33 = arith.addf %31, %32 : vector<1x512xf32>
    %c2_23 = arith.constant 2 : index
    %c0_24 = arith.constant 0 : index
    %c0_25 = arith.constant 0 : index
    %34 = vector.load %arg7[%c2_23, %c0_24, %c0_25] : memref<4x1x512xf32, #tpu.memory_space<vmem>>, vector<1x1x512xf32>
    %35 = vector.shape_cast %34 : vector<1x1x512xf32> to vector<1x512xf32>
    %36 = vector.shape_cast %33 : vector<1x512xf32> to vector<1x1x512xf32>
    tpu.vector_store %arg7[%c2_23, %c0_24, %c0_25], %36 {strides = array<i32>} : memref<4x1x512xf32, #tpu.memory_space<vmem>>, vector<1x1x512xf32>,
    %c3 = arith.constant 3 : index
    %c0_26 = arith.constant 0 : index
    %c0_27 = arith.constant 0 : index
    %37 = vector.load %arg7[%c3, %c0_26, %c0_27] : memref<4x1x512xf32, #tpu.memory_space<vmem>>, vector<1x1x512xf32>
    %38 = vector.shape_cast %37 : vector<1x1x512xf32> to vector<1x512xf32>
    %39 = arith.addf %38, %22 : vector<1x512xf32>
    %c3_28 = arith.constant 3 : index
    %c0_29 = arith.constant 0 : index
    %c0_30 = arith.constant 0 : index
    %40 = vector.load %arg7[%c3_28, %c0_29, %c0_30] : memref<4x1x512xf32, #tpu.memory_space<vmem>>, vector<1x1x512xf32>
    %41 = vector.shape_cast %40 : vector<1x1x512xf32> to vector<1x512xf32>
    %42 = vector.shape_cast %39 : vector<1x512xf32> to vector<1x1x512xf32>
    tpu.vector_store %arg7[%c3_28, %c0_29, %c0_30], %42 {strides = array<i32>} : memref<4x1x512xf32, #tpu.memory_space<vmem>>, vector<1x1x512xf32>,
    return
  }
  func.func @transform_0(%arg0: i32, %arg1: i32) -> (i32, i32) {
    %c1_i32 = arith.constant 1 : i32
    %0 = arith.muli %arg0, %c1_i32 : i32
    %1 = arith.addi %0, %arg1 : i32
    %c0_i32 = arith.constant 0 : i32
    %c0_i32_0 = arith.constant 0 : i32
    return %1, %c0_i32 : i32, i32
  }
  func.func @transform_1(%arg0: i32, %arg1: i32) -> (i32, i32) {
    %c1_i32 = arith.constant 1 : i32
    %0 = arith.muli %arg0, %c1_i32 : i32
    %1 = arith.addi %0, %arg1 : i32
    %c0_i32 = arith.constant 0 : i32
    %c0_i32_0 = arith.constant 0 : i32
    return %1, %c0_i32 : i32, i32
  }
  func.func @transform_2(%arg0: i32, %arg1: i32) -> (i32, i32) {
    %c1_i32 = arith.constant 1 : i32
    %0 = arith.muli %arg0, %c1_i32 : i32
    %1 = arith.addi %0, %arg1 : i32
    %c0_i32 = arith.constant 0 : i32
    %c0_i32_0 = arith.constant 0 : i32
    return %1, %c0_i32 : i32, i32
  }
  func.func @transform_3(%arg0: i32, %arg1: i32) -> (i32, i32) {
    %c1_i32 = arith.constant 1 : i32
    %0 = arith.muli %arg0, %c1_i32 : i32
    %1 = arith.addi %0, %arg1 : i32
    %c0_i32 = arith.constant 0 : i32
    %c0_i32_0 = arith.constant 0 : i32
    return %1, %c0_i32 : i32, i32
  }
  func.func @transform_4(%arg0: i32, %arg1: i32) -> (i32, i32) {
    %c1_i32 = arith.constant 1 : i32
    %0 = arith.muli %arg0, %c1_i32 : i32
    %1 = arith.addi %0, %arg1 : i32
    %c0_i32 = arith.constant 0 : i32
    %c0_i32_0 = arith.constant 0 : i32
    return %1, %c0_i32 : i32, i32
  }
  func.func @transform_5(%arg0: i32, %arg1: i32) -> (i32, i32, i32) {
    %c0_i32 = arith.constant 0 : i32
    %c0_i32_0 = arith.constant 0 : i32
    %c0_i32_1 = arith.constant 0 : i32
    return %arg0, %c0_i32, %c0_i32_0 : i32, i32, i32
  }
}

</mosaic_0001>

<bundles_post_ra>
// kernel: tpu_custom_call.1
= control target key start
LH: loop header
LB: loop body
LE: loop exit
PB: predicated region body
PF: predicated region fallthrough
CT: control target
= control target key end

     0   :  { %10 = vsyncpa [#allocation3], 0  ;;  %s416_s0 = inlined_call_operand.hbm [shape: f32[1,512], index: 0, kind: input, shape index: {}]   ;;  %s417_s1 = inlined_call_operand.hbm [shape: f32[1,512], index: 1, kind: input, shape index: {}]   ;;  %s418_s2 = inlined_call_operand.hbm [shape: f32[1,512], index: 2, kind: input, shape index: {}]   ;;  %s419_s3 = inlined_call_operand.hbm [shape: f32[1,512], index: 3, kind: input, shape index: {}]   ;;  %s420_s4 = inlined_call_operand.hbm [shape: f32[1,512], index: 4, kind: input, shape index: {}]   ;;  %s421_s5 = inlined_call_operand.hbm [shape: f32[4,1,512], index: 5, kind: output, shape index: {}]  }
   0x1   :  { %11 = vsyncpa [#allocation6], 0 }
   0x2   :  { %12 = vsyncpa [#allocation9], 0  ;;  %s36_s20 = sshll.u32 %s417_s1, 4  ;;  %s37_s20 = int_to_ptr.hbm [resolvable:$true] %s36_s20 }
   0x3   :  { %13 = vsyncpa [#allocation4], 0  ;;  %s339_s21 = smov [#allocation5]   ;;  %s64_s25 = sshll.u32 %s419_s3, 4  ;;  %s65_s25 = int_to_ptr.hbm [resolvable:$true] %s64_s25 }
   0x4   :  { %s38_s22 = sshll.u32 %s339_s21, 4  ;;  %s340_s26 = smov [#allocation8]   ;;  %s39_s22 = int_to_ptr.vmem [resolvable:$true] %s38_s22 }
   0x5   :  { %41 = dma.hbm_to_vmem [thread:$0]  %s37_s20, 64, %s39_s22, [#allocation6]  }
   0x6   :  { %s66_s27 = sshll.u32 %s340_s26, 4  ;;  %s22_s30 = sshll.u32 %s416_s0, 4  ;;  %s67_s27 = int_to_ptr.vmem [resolvable:$true] %s66_s27  ;;  %s23_s30 = int_to_ptr.hbm [resolvable:$true] %s22_s30 }
   0x7   :  { %69 = dma.hbm_to_vmem [thread:$0]  %s65_s25, 64, %s67_s27, [#allocation9]  }
   0x8   :  { %s50_s7 = sshll.u32 %s418_s2, 4  ;;  %s341_s8 = smov [#allocation2]   ;;  %s51_s7 = int_to_ptr.hbm [resolvable:$true] %s50_s7 }
   0x9   :  { %s24_s9 = sshll.u32 %s341_s8, 4  ;;  %s342_s3 = smov [#allocation7]   ;;  %s25_s9 = int_to_ptr.vmem [resolvable:$true] %s24_s9 }
   0xa   :  { %27 = dma.hbm_to_vmem [thread:$0]  %s23_s30, 64, %s25_s9, [#allocation3]  }
   0xb   :  { %s52_s10 = sshll.u32 %s342_s3, 4  ;;  %s78_s13 = sshll.u32 %s420_s4, 4  ;;  %s53_s10 = int_to_ptr.vmem [resolvable:$true] %s52_s10  ;;  %s79_s13 = int_to_ptr.hbm [resolvable:$true] %s78_s13 }
   0xc   :  { %55 = dma.hbm_to_vmem [thread:$0]  %s51_s7, 64, %s53_s10, [#allocation6]  }
   0xd   :  { %s343_s0 = smov [#allocation10]  }
   0xe   :  { %s80_s14 = sshll.u32 %s343_s0, 4  ;;  %s81_s14 = int_to_ptr.vmem [resolvable:$true] %s80_s14 }
   0xf   :  { %83 = dma.hbm_to_vmem [thread:$0]  %s79_s13, 64, %s81_s14, [#allocation9]  }
  0x10   :  { %331 = dma.done.wait [#allocation3], 64  }
  0x11   :  { %332 = vsyncadd [#allocation3], 4294967232 }
  0x12   :  { %333 = dma.done.wait [#allocation6], 128  }
  0x13   :  { %334 = vsyncadd [#allocation6], 4294967168 }
  0x14   :  { %335 = dma.done.wait [#allocation9], 128  }
  0x15   :  { %336 = vsyncadd [#allocation9], 4294967168  ;;  %v113_v0 = vlaneseq  ;;  %v344_v2 = vmov 0.0   ;;  %v121_v3 = vld [vmem:[#allocation2] sm:$0xf]  ;;  %s345_s2 = smov [#allocation11]  }
  0x16   :  { %v122_v4 = vld [vmem:[#allocation5] sm:$0xf]  ;;  %v125_v6 = vld [vmem:[#allocation7] sm:$0xf]  ;;  %v139_v14 = vld [vmem:[#allocation10] sm:$0xf] }
  0x17   :  { %vm393_vm0 = vcmp.lt.s32.totalorder %v113_v0, 512  ;;  %v123_v5 = vsub.f32 %v121_v3, %v122_v4  ;;  %v138_v19 = vld [vmem:[#allocation8] sm:$0xf]  ;;  %s159_s4 = sshll.u32 %s345_s2, 4  ;;  %s161_s17 = sshll.u32 %s421_s5, 4  ;;  %s160_s4 = int_to_ptr.vmem [resolvable:$true] %s159_s4  ;;  %s162_s17 = int_to_ptr.hbm [resolvable:$true] %s161_s17 }
  0x18   :  { %117 = vst.msk [vmem:[#allocation11] sm:$0xf] %vm393_vm0, %v344_v2  ;;  %s346_s18 = smov 64   ;;  %s347_s19 = smov 4  }
  0x19   :  { %118 = vst.msk [vmem:[#allocation11 + $0x4] sm:$0xf] %vm393_vm0, %v344_v2  ;;  %v124_v7 = vmul.f32 %v123_v5, %v123_v5  ;;  %v140_v8 = vand.u32 2147483647, %v123_v5 }
  0x1a   :  { %119 = vst.msk [vmem:[#allocation11 + $0x8] sm:$0xf] %vm393_vm0, %v344_v2 }
  0x1b   :  { %120 = vst.msk [vmem:[#allocation11 + $0xc] sm:$0xf] %vm393_vm0, %v344_v2  ;;  %v127_v11 = vmul.f32 %v125_v6, %v124_v7  ;;  %v141_v12 = vmul.f32 -40.0, %v140_v8 }
  0x1d   :  { %v142_v17 = vmul.f32 1.442695, %v141_v12 }
  0x1f   :  { %v126_v9 = vld [vmem:[#allocation11] sm:$0xf]  ;;  %185 = vpow2.f32 %v142_v17 }
  0x20   :  { %v135_v10 = vld [vmem:[#allocation11 + $0x4] sm:$0xf]  ;;  %v128_v16 = vadd.f32 %v127_v11, %v126_v9 }
  0x21   :  { %v136_v13 = vadd.f32 %v135_v10, %v125_v6  ;;  %v147_v23 = vld [vmem:[#allocation11 + $0x8] sm:$0xf] }
  0x22   :  { %v152_v15 = vld [vmem:[#allocation11 + $0xc] sm:$0xf]  ;;  %133 = vst.msk [vmem:[#allocation11] sm:$0xf] %vm393_vm0, %v128_v16 }
  0x23   :  { %137 = vst.msk [vmem:[#allocation11 + $0x4] sm:$0xf] %vm393_vm0, %v136_v13  ;;  %v153_v18 = vadd.f32 %v152_v15, %v139_v14 }
  0x25   :  { %154 = vst.msk [vmem:[#allocation11 + $0xc] sm:$0xf] %vm393_vm0, %v153_v18  ;;  %v186_v20 = vpop.eup %185 }
  0x26   :  { %v144_v21 = vsub.f32 %v138_v19, %v186_v20 }
  0x28   :  { %v145_v22 = vmul.f32 %v144_v21, %v144_v21 }
  0x2a   :  { %v148_v24 = vmul.f32 %v145_v22, %v139_v14 }
  0x2c   :  { %v149_v25 = vadd.f32 %v148_v24, %v147_v23 }
  0x2e   :  { %150 = vst.msk [vmem:[#allocation11 + $0x8] sm:$0xf] %vm393_vm0, %v149_v25 }
  0x2f   :  { %167 = dma.vmem_to_hbm [thread:$0]  %s160_s4, 256, %s162_s17, [#allocation4], %s346_s18, %s346_s18, %s347_s19  }
  0x30   :  { %337 = dma.done.wait [#allocation4], 256  }
  0x31   :  { %338 = vsyncadd [#allocation4], 4294967040 }
  0x32   :  { %172 = vsyncpa [#allocation3], 1 }
  0x33   :  { %173 = vsyncpa [#allocation6], 1 }
  0x34   :  { %174 = vsyncpa [#allocation9], 1 }
  0x35   :  { %175 = vsyncpa [#allocation4], 1 }

</bundles_post_ra>
